<compile_context>
chip_gen: v7x
topology: tpu7x:2x2x1
jax: 0.10.0
libtpu: 0.0.40
codegen_flags: <defaults>
</compile_context>

<pallas_src>
import functools

import jax
import jax.numpy as jnp
from jax.experimental import pallas as pl
from jax.experimental.pallas import tpu as pltpu


# ---------------------------------------------------------------------------
# Kernels
# ---------------------------------------------------------------------------

def _layernorm_kernel(x_ref, a_ref, b_ref, o_ref, *, eps, n, inv_nm1):
    """Plain path: feature dim on the lane axis (ideal when F % 128 == 0)."""
    x = x_ref[...].astype(jnp.float32)                     # (tr, F)
    s = jnp.sum(x, axis=-1, keepdims=True)                 # (tr, 1)
    sq = jnp.sum(x * x, axis=-1, keepdims=True)            # (tr, 1)
    mean = s * (1.0 / n)
    # Fused unbiased variance: sum(x^2) - N*mean^2, clamped (>=0) for safety.
    var = jnp.maximum(sq - s * mean, 0.0) * inv_nm1
    inv = 1.0 / (jnp.sqrt(var) + eps)                      # exact; hidden under DMA
    a = a_ref[...].astype(jnp.float32)                     # (1, F)
    b = b_ref[...].astype(jnp.float32)                     # (1, F)
    o_ref[...] = (a * ((x - mean) * inv) + b).astype(o_ref.dtype)


def _layernorm_folded_kernel(x_ref, seg_ref, a_ref, b_ref, o_ref,
                             *, eps, n, inv_nm1):
    """Lane-folded path for small F: g rows folded into a 128-wide lane dim.

    Per-logical-row (segmented) sums are computed with a block-diagonal matmul
    on the otherwise-idle MXU; the result is already broadcast across each
    segment, so everything stays lane-dense (full-width vst on stores) and no
    cross-lane XLU reductions / in-kernel reshapes are needed.
    """
    x = x_ref[...].astype(jnp.float32)                     # (tr, L), L = g*F = 128
    seg = seg_ref[...]                                     # (L, L) block-diag ones
    s = jnp.dot(x, seg, preferred_element_type=jnp.float32)       # segment sums
    sq = jnp.dot(x * x, seg, preferred_element_type=jnp.float32)  # segment sums of x^2
    mean = s * (1.0 / n)
    var = jnp.maximum(sq - s * mean, 0.0) * inv_nm1
    inv = 1.0 / (jnp.sqrt(var) + eps)
    a = a_ref[...].astype(jnp.float32)                     # (1, L): a_2 tiled g times
    b = b_ref[...].astype(jnp.float32)                     # (1, L): b_2 tiled g times
    o_ref[...] = (a * ((x - mean) * inv) + b).astype(o_ref.dtype)


# ---------------------------------------------------------------------------
# Wrapper helpers
# ---------------------------------------------------------------------------

def _vmem_params():
    """(scoped vmem_limit_bytes, per-step tile budget), generation aware."""
    try:
        cap = int(pltpu.get_tpu_info().vmem_capacity_bytes)
    except Exception:
        cap = None
    if cap is None or cap <= (64 << 20):
        # v7x (64 MiB physical / TC) or unknown: conservative.
        return 40 << 20, 14 << 20
    # v5e / v6e: 128 MiB physical VMEM (v5e default scoped limit is only
    # 16 MiB, so the explicit override matters there too).
    return 64 << 20, 28 << 20


def _pick_tile_rows(rows, lane_width, itemsize, tile_budget_bytes,
                    *, max_tile_rows=1024):
    """Largest row tile fitting the budget; multiple of 8; >=4 steps if possible."""
    if rows <= 8:
        # Block equal to the full row extent is always legal.
        return int(rows)
    # Per-step bytes per row:
    #   DMA tiles: 2 (double buffer) x 2 (in + out) x lane_width x itemsize
    #   f32 compute temps: ~2 live (tr, lane_width) float32 intermediates
    #   (single-buffered, compute phase only).
    per_row = 4 * lane_width * itemsize + 2 * lane_width * 4
    tr = max(tile_budget_bytes // per_row, 8)
    tr = min(tr, max_tile_rows)
    # Megacore (v7x) load balance: aim for >= 4 near-equal steps (2 per TC).
    # No effect on v5e/v6e (single TC) beyond slightly smaller tiles.
    quarter = ((pl.cdiv(rows, 4) + 7) // 8) * 8
    tr = min(tr, max(quarter, 8))
    tr = max((tr // 8) * 8, 8)
    return int(tr)


def _run_pallas(kernel, inputs, in_specs, rows, lane_width, out_dtype, tr,
                vmem_limit):
    grid = pl.cdiv(rows, tr)  # last block may be partial; rows are independent
    return pl.pallas_call(
        kernel,
        out_shape=jax.ShapeDtypeStruct((rows, lane_width), out_dtype),
        grid_spec=pltpu.PrefetchScalarGridSpec(
            num_scalar_prefetch=0,
            grid=(grid,),
            in_specs=in_specs,
            out_specs=pl.BlockSpec((tr, lane_width), lambda i: (i, 0)),
        ),
        compiler_params=pltpu.CompilerParams(
            dimension_semantics=("parallel",),
            vmem_limit_bytes=vmem_limit,
        ),
    )(*inputs)


def layer_norm(x, a_2, b_2, eps=1e-6, *, tile_rows=None):
    """Pallas TPU LayerNorm matching the PyTorch module.

    x: (..., features); a_2, b_2: (features,)
    """
    features = x.shape[-1]
    orig_shape = x.shape
    x2d = x.reshape(-1, features)
    rows = x2d.shape[0]
    itemsize = jnp.dtype(x.dtype).itemsize
    vmem_limit, tile_budget = _vmem_params()

    n = float(features)
    # NOTE: torch.std of a single element is NaN; we clamp to 1 (harmless
    # semantic mismatch for the degenerate features == 1 case).
    inv_nm1 = 1.0 / float(max(features - 1, 1))

    fold = 128 // features if (features < 128 and 128 % features == 0) else 1
    if fold > 1 and rows % fold == 0:
        # ---- Lane-folded path (small feature dims) ----
        lane = fold * features                               # == 128
        rows_f = rows // fold
        xf = x2d.reshape(rows_f, lane)                       # pure row-major fold
        idx = jnp.arange(lane) // features
        seg = (idx[:, None] == idx[None, :]).astype(jnp.float32)   # (128, 128)
        af = jnp.tile(a_2.reshape(-1), fold).reshape(1, lane)
        bf = jnp.tile(b_2.reshape(-1), fold).reshape(1, lane)
        tr = tile_rows if tile_rows is not None else _pick_tile_rows(
            rows_f, lane, itemsize, tile_budget)
        kernel = functools.partial(_layernorm_folded_kernel,
                                   eps=float(eps), n=n, inv_nm1=inv_nm1)
        in_specs = [
            pl.BlockSpec((tr, lane), lambda i: (i, 0)),
            pl.BlockSpec((lane, lane), lambda i: (0, 0)),
            pl.BlockSpec((1, lane), lambda i: (0, 0)),
            pl.BlockSpec((1, lane), lambda i: (0, 0)),
        ]
        out = _run_pallas(kernel, (xf, seg, af, bf), in_specs, rows_f, lane,
                          x.dtype, tr, vmem_limit)
        return out.reshape(orig_shape)

    # ---- Plain path: features on the lane axis ----
    # TODO(synk): feature dims that are neither multiples of 128 nor divisors
    # of 128 (with rows % fold == 0) still use masked stores on the last-dim
    # remainder; a padded-lane variant would be needed for those shapes.
    a2d = a_2.reshape(1, features)
    b2d = b_2.reshape(1, features)
    tr = tile_rows if tile_rows is not None else _pick_tile_rows(
        rows, features, itemsize, tile_budget)
    kernel = functools.partial(_layernorm_kernel,
                               eps=float(eps), n=n, inv_nm1=inv_nm1)
    in_specs = [
        pl.BlockSpec((tr, features), lambda i: (i, 0)),
        pl.BlockSpec((1, features), lambda i: (0, 0)),
        pl.BlockSpec((1, features), lambda i: (0, 0)),
    ]
    out = _run_pallas(kernel, (x2d, a2d, b2d), in_specs, rows, features,
                      x.dtype, tr, vmem_limit)
    return out.reshape(orig_shape)


# ---------------------------------------------------------------------------
# Self-test
# ---------------------------------------------------------------------------

if __name__ == "__main__":
    key = jax.random.PRNGKey(0)
    eps = 1e-6

    def ref_layernorm(x, a, b):
        mean = jnp.mean(x, axis=-1, keepdims=True)
        var = jnp.sum((x - mean) ** 2, axis=-1, keepdims=True) / (x.shape[-1] - 1)
        return a * (x - mean) / (jnp.sqrt(var) + eps) + b

    k1, k2, k3, k4 = jax.random.split(key, 4)
    batch, seq = 2, 8

    # 1) Module-default params (ones / zeros), hidden=32 -> lane-folded path.
    hidden = 32
    a_2 = jnp.ones((hidden,), dtype=jnp.float32)
    b_2 = jnp.zeros((hidden,), dtype=jnp.float32)
    x = jax.random.normal(k1, (batch, seq, hidden), dtype=jnp.float32)
    y = layer_norm(x, a_2, b_2, eps=eps)
    jax.block_until_ready(y)
    assert jnp.allclose(y, ref_layernorm(x, a_2, b_2), atol=1e-4, rtol=1e-4), \
        "mismatch (folded path, default params)"

    # 2) Non-trivial params, hidden=32 -> validates the folded weight tiling.
    a_r = jax.random.normal(k2, (hidden,), dtype=jnp.float32)
    b_r = jax.random.normal(k3, (hidden,), dtype=jnp.float32)
    y = layer_norm(x, a_r, b_r, eps=eps)
    jax.block_until_ready(y)
    assert jnp.allclose(y, ref_layernorm(x, a_r, b_r), atol=1e-4, rtol=1e-4), \
        "mismatch (folded path, random params)"

    # 3) Lane-dense hidden=256 -> plain path.
    hidden2 = 256
    a2 = jnp.ones((hidden2,), dtype=jnp.float32)
    b2 = jnp.zeros((hidden2,), dtype=jnp.float32)
    x2 = jax.random.normal(k4, (batch, seq, hidden2), dtype=jnp.float32)
    y2 = layer_norm(x2, a2, b2, eps=eps)
    jax.block_until_ready(y2)
    assert jnp.allclose(y2, ref_layernorm(x2, a2, b2), atol=1e-4, rtol=1e-4), \
        "mismatch (plain path)"

    print("KERNEL_OK")
</pallas_src>

<mosaic_0001>
module attributes {stable_mosaic.version = 11 : i64} {
  func.func @_layernorm_folded_kernel(%arg0: i32, %arg1: memref<4x128xf32, #tpu.memory_space<vmem>>, %arg2: memref<128x128xf32, #tpu.memory_space<vmem>>, %arg3: memref<1x128xf32, #tpu.memory_space<vmem>>, %arg4: memref<1x128xf32, #tpu.memory_space<vmem>>, %arg5: memref<4x128xf32, #tpu.memory_space<vmem>>) attributes {dimension_semantics = [#tpu.dimension_semantics<parallel>], iteration_bounds = array<i64: 1>, scalar_prefetch = 0 : i64, scratch_operands = 0 : i64, tpu.core_type = #tpu.core_type<tc>, window_params = [{transform_indices = @transform_0, window_bounds = array<i64: 4, 128>}, {pipeline_mode = #tpu.pipeline_mode<synchronous>, transform_indices = @transform_1, window_bounds = array<i64: 128, 128>}, {pipeline_mode = #tpu.pipeline_mode<synchronous>, transform_indices = @transform_2, window_bounds = array<i64: 1, 128>}, {pipeline_mode = #tpu.pipeline_mode<synchronous>, transform_indices = @transform_3, window_bounds = array<i64: 1, 128>}, {transform_indices = @transform_4, window_bounds = array<i64: 4, 128>}]} {
    %c0 = arith.constant 0 : index
    %c0_0 = arith.constant 0 : index
    %0 = vector.load %arg1[%c0, %c0_0] : memref<4x128xf32, #tpu.memory_space<vmem>>, vector<4x128xf32>
    %c0_1 = arith.constant 0 : index
    %c0_2 = arith.constant 0 : index
    %1 = vector.load %arg2[%c0_1, %c0_2] : memref<128x128xf32, #tpu.memory_space<vmem>>, vector<128x128xf32>
    %cst = arith.constant dense<0.000000e+00> : vector<4x128xf32>
    %2 = tpu.matmul %0, %1, %cst {dimension_numbers = #tpu.dot_dimension_numbers<[1], [0], [0], [1], [0, 0, 1, 1], [], []>} : vector<4x128xf32>, vector<128x128xf32>, vector<4x128xf32> -> vector<4x128xf32>
    %3 = arith.mulf %0, %0 : vector<4x128xf32>
    %cst_3 = arith.constant dense<0.000000e+00> : vector<4x128xf32>
    %4 = tpu.matmul %3, %1, %cst_3 {dimension_numbers = #tpu.dot_dimension_numbers<[1], [0], [0], [1], [0, 0, 1, 1], [], []>} : vector<4x128xf32>, vector<128x128xf32>, vector<4x128xf32> -> vector<4x128xf32>
    %cst_4 = arith.constant 3.125000e-02 : f32
    %5 = vector.broadcast %cst_4 : f32 to vector<4x128xf32>
    %6 = arith.mulf %2, %5 : vector<4x128xf32>
    %7 = arith.mulf %2, %6 : vector<4x128xf32>
    %8 = arith.subf %4, %7 : vector<4x128xf32>
    %cst_5 = arith.constant 0.000000e+00 : f32
    %9 = vector.broadcast %cst_5 : f32 to vector<4x128xf32>
    %10 = arith.maximumf %8, %9 : vector<4x128xf32>
    %cst_6 = arith.constant 0.0322580636 : f32
    %11 = vector.broadcast %cst_6 : f32 to vector<4x128xf32>
    %12 = arith.mulf %10, %11 : vector<4x128xf32>
    %13 = math.sqrt %12 : vector<4x128xf32>
    %cst_7 = arith.constant 9.99999997E-7 : f32
    %14 = vector.broadcast %cst_7 : f32 to vector<4x128xf32>
    %15 = arith.addf %13, %14 : vector<4x128xf32>
    %cst_8 = arith.constant 1.000000e+00 : f32
    %16 = vector.broadcast %cst_8 : f32 to vector<4x128xf32>
    %17 = arith.divf %16, %15 : vector<4x128xf32>
    %c0_9 = arith.constant 0 : index
    %c0_10 = arith.constant 0 : index
    %18 = vector.load %arg3[%c0_9, %c0_10] : memref<1x128xf32, #tpu.memory_space<vmem>>, vector<1x128xf32>
    %c0_11 = arith.constant 0 : index
    %c0_12 = arith.constant 0 : index
    %19 = vector.load %arg4[%c0_11, %c0_12] : memref<1x128xf32, #tpu.memory_space<vmem>>, vector<1x128xf32>
    %20 = arith.subf %0, %6 : vector<4x128xf32>
    %21 = arith.mulf %20, %17 : vector<4x128xf32>
    %22 = vector.broadcast %18 : vector<1x128xf32> to vector<4x128xf32>
    %23 = arith.mulf %22, %21 : vector<4x128xf32>
    %24 = vector.broadcast %19 : vector<1x128xf32> to vector<4x128xf32>
    %25 = arith.addf %23, %24 : vector<4x128xf32>
    %c0_13 = arith.constant 0 : index
    %c0_14 = arith.constant 0 : index
    %26 = vector.load %arg5[%c0_13, %c0_14] : memref<4x128xf32, #tpu.memory_space<vmem>>, vector<4x128xf32>
    tpu.vector_store %arg5[%c0_13, %c0_14], %25 {strides = array<i32>} : memref<4x128xf32, #tpu.memory_space<vmem>>, vector<4x128xf32>,
    return
  }
  func.func @transform_0(%arg0: i32) -> (i32, i32) {
    %c0_i32 = arith.constant 0 : i32
    %c0_i32_0 = arith.constant 0 : i32
    return %arg0, %c0_i32 : i32, i32
  }
  func.func @transform_1(%arg0: i32) -> (i32, i32) {
    %c0_i32 = arith.constant 0 : i32
    %c0_i32_0 = arith.constant 0 : i32
    %c0_i32_1 = arith.constant 0 : i32
    return %c0_i32, %c0_i32_0 : i32, i32
  }
  func.func @transform_2(%arg0: i32) -> (i32, i32) {
    %c0_i32 = arith.constant 0 : i32
    %c0_i32_0 = arith.constant 0 : i32
    %c0_i32_1 = arith.constant 0 : i32
    return %c0_i32, %c0_i32_0 : i32, i32
  }
  func.func @transform_3(%arg0: i32) -> (i32, i32) {
    %c0_i32 = arith.constant 0 : i32
    %c0_i32_0 = arith.constant 0 : i32
    %c0_i32_1 = arith.constant 0 : i32
    return %c0_i32, %c0_i32_0 : i32, i32
  }
  func.func @transform_4(%arg0: i32) -> (i32, i32) {
    %c0_i32 = arith.constant 0 : i32
    %c0_i32_0 = arith.constant 0 : i32
    return %arg0, %c0_i32 : i32, i32
  }
}

</mosaic_0001>

<bundles_post_ra>
// kernel: tpu_custom_call.1
= control target key start
LH: loop header
LB: loop body
LE: loop exit
PB: predicated region body
PF: predicated region fallthrough
CT: control target
= control target key end

     0   :  { %9 = vsyncpa [#allocation3], 0  ;;  %s572_s0 = inlined_call_operand.hbm [shape: f32[4,128], index: 0, kind: input, shape index: {}]   ;;  %s573_s1 = inlined_call_operand.hbm [shape: f32[128,128], index: 1, kind: input, shape index: {}]   ;;  %s574_s2 = inlined_call_operand.vmem [shape: f32[1,128], index: 2, kind: input, shape index: {}]   ;;  %s575_s3 = inlined_call_operand.vmem [shape: f32[1,128], index: 3, kind: input, shape index: {}]   ;;  %s576_s4 = inlined_call_operand.hbm [shape: f32[4,128], index: 4, kind: output, shape index: {}]  }
   0x1   :  { %10 = vsyncpa [#allocation6], 0 }
   0x2   :  { %11 = vsyncpa [#allocation4], 0  ;;  %s490_s15 = smov [#allocation2]   ;;  %s491_s17 = smov [#allocation5]  }
   0x3   :  { %s18_s16 = sshll.u32 %s490_s15, 4  ;;  %s27_s18 = sshll.u32 %s491_s17, 4  ;;  %s19_s16 = int_to_ptr.vmem [resolvable:$true] %s18_s16  ;;  %s523_s18 = int_to_ptr.vmem [resolvable:$true] %s27_s18 }
   0x4   :  { %s418_s21 = scalar_lea.hbm %s572_s0, 64 }
   0x5   :  { %p419_p0 = scmp.ne.s32.totalorder %s572_s0, %s418_s21  ;;  %p422_p1 = scmp.lt.u32.totalorder %s418_s21, %s572_s0 }
   0x7   :  { %p424_p2 = pnand %p422_p1, %p419_p0 }
   0x9   :  { %427 = shalt.err (!%p424_p2)
}
   0xa   :  { %s428_s26 = scalar_lea.vmem %s19_s16, 64  ;;  %p433_p4 = scmp.lt.s32.totalorder %s19_s16, %s19_s16 }
   0xb   :  { %p429_p3 = scmp.ne.s32.totalorder %s19_s16, %s428_s26  ;;  %p434_p5 = scmp.lt.s32.totalorder %s428_s26, %s428_s26 }
   0xd   :  { %p435_p6 = por %p434_p5, %p433_p4 }
   0xf   :  { %p436_p7 = pnand %p435_p6, %p429_p3 }
  0x11   :  { %439 = shalt.err (!%p436_p7)
}
  0x12   :  { %21 = dma.hbm_to_vmem [thread:$0]  %s572_s0, 64, %s19_s16, [#allocation3]  }
  0x13   :  { %s440_s5 = scalar_lea.hbm %s573_s1, 2048 }
  0x14   :  { %p441_p8 = scmp.ne.s32.totalorder %s573_s1, %s440_s5  ;;  %p444_p9 = scmp.lt.u32.totalorder %s440_s5, %s573_s1 }
  0x16   :  { %p446_p10 = pnand %p444_p9, %p441_p8 }
  0x18   :  { %449 = shalt.err (!%p446_p10)
}
  0x19   :  { %s450_s10 = scalar_lea.vmem %s523_s18, 2048  ;;  %p455_p12 = scmp.lt.s32.totalorder %s523_s18, %s523_s18 }
  0x1a   :  { %p451_p11 = scmp.ne.s32.totalorder %s523_s18, %s450_s10  ;;  %p456_p13 = scmp.lt.s32.totalorder %s450_s10, %s450_s10 }
  0x1c   :  { %p457_p0 = por %p456_p13, %p455_p12 }
  0x1e   :  { %p458_p1 = pnand %p457_p0, %p451_p11 }
  0x20   :  { %461 = shalt.err (!%p458_p1)
}
  0x21   :  { %s492_s0 = smov 128   ;;  %s493_s11 = smov 8  }
  0x22   :  { %33 = dma.hbm_to_vmem [thread:$0]  %s573_s1, 2048, %s523_s18, [#allocation6], %s492_s0, %s492_s0, %s493_s11  }
  0x23   :  { %484 = dma.done.wait [#allocation3], 64  }
  0x24   :  { %485 = vsyncadd [#allocation3], 4294967232 }
  0x25   :  { %486 = dma.done.wait [#allocation6], 2048  }
  0x26   :  { %487 = vsyncadd [#allocation6], 4294965248  ;;  %v494_v0 = vmov 0.0|0.0   ;;  %vm495_vm0 = vmmov 0   ;;  %v496_v1 = vmov 0.0   ;;  %v45_v2 = vld [vmem:[#allocation5] sm:$0xff] }
  0x27   :  { %358 = vmatprep.subr.bf16.mxu0 %v494_v0  ;;  %382 = vmatprep.subr.bf16.mxu1 %v494_v0  ;;  %v46_v3 = vld [vmem:[#allocation5 + $0x8] sm:$0xff]  ;;  %v47_v4 = vld [vmem:[#allocation5 + $0x10] sm:$0xff]  ;;  %v48_v6 = vld [vmem:[#allocation5 + $0x18] sm:$0xff]  ;;  %s497_s17 = smov [#allocation7]  }
  0x28   :  { %320 = vmatprep.mubr.msk.f32.mxu0 %vm495_vm0, %v496_v1  ;;  %355 = vmatprep.mubr.msk.f32.mxu1 %vm495_vm0, %v496_v1  ;;  %v359_v5 = vpack.c.bf16 %v46_v3, %v45_v2  ;;  %v362_v7 = vpack.c.bf16 %v48_v6, %v47_v4  ;;  %v49_v8 = vld [vmem:[#allocation5 + $0x20] sm:$0xff]  ;;  %v50_v9 = vld [vmem:[#allocation5 + $0x28] sm:$0xff]  ;;  %v51_v11 = vld [vmem:[#allocation5 + $0x30] sm:$0xff]  ;;  %s242_s18 = sshll.u32 %s497_s17, 4  ;;  %s243_s18 = int_to_ptr.vmem [resolvable:$true] %s242_s18 }
  0x29   :  { %v365_v10 = vpack.c.bf16 %v50_v9, %v49_v8  ;;  %v52_v12 = vld [vmem:[#allocation5 + $0x38] sm:$0xff]  ;;  %v53_v14 = vld [vmem:[#allocation5 + $0x40] sm:$0xff]  ;;  %v54_v15 = vld [vmem:[#allocation5 + $0x48] sm:$0xff]  ;;  %s462_s19 = scalar_lea.vmem %s243_s18, 64  ;;  %p467_p3 = scmp.lt.s32.totalorder %s243_s18, %s243_s18 }
  0x2a   :  { %360 = vmatpush3.bf16.msra.mxu0 %v359_v5  ;;  %384 = vmatpush3.bf16.msra.mxu1 %v359_v5  ;;  %v368_v13 = vpack.c.bf16 %v52_v12, %v51_v11  ;;  %v371_v16 = vpack.c.bf16 %v54_v15, %v53_v14  ;;  %v55_v17 = vld [vmem:[#allocation5 + $0x50] sm:$0xff]  ;;  %v56_v18 = vld [vmem:[#allocation5 + $0x58] sm:$0xff]  ;;  %v57_v20 = vld [vmem:[#allocation5 + $0x60] sm:$0xff]  ;;  %p463_p2 = scmp.ne.s32.totalorder %s243_s18, %s462_s19  ;;  %p468_p4 = scmp.lt.s32.totalorder %s462_s19, %s462_s19 }
  0x2b   :  { %361 = vmatprep.subr.bf16.mxu0 %v494_v0  ;;  %385 = vmatprep.subr.bf16.mxu1 %v494_v0  ;;  %v374_v19 = vpack.c.bf16 %v56_v18, %v55_v17  ;;  %v58_v21 = vld [vmem:[#allocation5 + $0x68] sm:$0xff]  ;;  %v59_v23 = vld [vmem:[#allocation5 + $0x70] sm:$0xff]  ;;  %v60_v24 = vld [vmem:[#allocation5 + $0x78] sm:$0xff] }
  0x2c   :  { %v377_v22 = vpack.c.bf16 %v58_v21, %v57_v20  ;;  %v380_v25 = vpack.c.bf16 %v60_v24, %v59_v23  ;;  %v44_v26 = vld [vmem:[#allocation2] sm:$0xf]  ;;  %p469_p5 = por %p468_p4, %p467_p3 }
  0x2d   :  { %v131_v27 = vmul.f32 %v44_v26, %v44_v26  ;;  %v252_v45 = vld [vmem:[%s574_s2] ss:$0 sm:$0xff] }
  0x2e   :  { %363 = vmatpush3.bf16.msra.mxu0 %v362_v7  ;;  %387 = vmatpush3.bf16.msra.mxu1 %v362_v7  ;;  %v253_v47 = vld [vmem:[%s575_s3] ss:$0 sm:$0xff]  ;;  %p470_p6 = pnand %p469_p5, %p463_p2 }
  0x2f   :  { %364 = vmatprep.subr.bf16.mxu0 %v494_v0  ;;  %388 = vmatprep.subr.bf16.mxu1 %v494_v0 }
  0x32   :  { %366 = vmatpush3.bf16.msra.mxu0 %v365_v10  ;;  %390 = vmatpush3.bf16.msra.mxu1 %v365_v10 }
  0x33   :  { %367 = vmatprep.subr.bf16.mxu0 %v494_v0  ;;  %391 = vmatprep.subr.bf16.mxu1 %v494_v0 }
  0x36   :  { %369 = vmatpush3.bf16.msra.mxu0 %v368_v13  ;;  %393 = vmatpush3.bf16.msra.mxu1 %v368_v13 }
  0x37   :  { %370 = vmatprep.subr.bf16.mxu0 %v494_v0  ;;  %394 = vmatprep.subr.bf16.mxu1 %v494_v0 }
  0x3a   :  { %372 = vmatpush3.bf16.msra.mxu0 %v371_v16  ;;  %396 = vmatpush3.bf16.msra.mxu1 %v371_v16 }
  0x3b   :  { %373 = vmatprep.subr.bf16.mxu0 %v494_v0  ;;  %397 = vmatprep.subr.bf16.mxu1 %v494_v0 }
  0x3e   :  { %375 = vmatpush3.bf16.msra.mxu0 %v374_v19  ;;  %399 = vmatpush3.bf16.msra.mxu1 %v374_v19 }
  0x3f   :  { %376 = vmatprep.subr.bf16.mxu0 %v494_v0  ;;  %400 = vmatprep.subr.bf16.mxu1 %v494_v0 }
  0x42   :  { %378 = vmatpush3.bf16.msra.mxu0 %v377_v22  ;;  %402 = vmatpush3.bf16.msra.mxu1 %v377_v22 }
  0x43   :  { %379 = vmatprep.subr.bf16.mxu0 %v494_v0  ;;  %403 = vmatprep.subr.bf16.mxu1 %v494_v0 }
  0x46   :  { %381 = vmatpush3.bf16.msra.mxu0 %v380_v25  ;;  %405 = vmatpush3.bf16.msra.mxu1 %v380_v25 }
  0x49   :  { %321 = vmatmul.mubr.f32.vlgmr.msra.gmra.mrb[0].mxu0 %v44_v26  ;;  %356 = vmatmul.mubr.f32.vlgmr.msra.gmra.mrb[0].mxu1 %v131_v27 }
 0x11c   :  { %v127_v28 = vpop.f32.mrb[0].mxu0  ;;  %v198_v29 = vpop.f32.mrb[0].mxu1 }
 0x11d   :  { %v202_v30 = vmul.f32 0.03125, %v127_v28  ;;  %v322_v31 = vpop.f32.mrb[1].mxu0  ;;  %v357_v32 = vpop.f32.mrb[1].mxu1 }
 0x11f   :  { %v203_v33 = vmul.f32 %v202_v30, %v127_v28  ;;  %v219_v43 = vsub.f32 %v44_v26, %v202_v30 }
 0x121   :  { %v204_v34 = vsub.f32 %v198_v29, %v203_v33 }
 0x123   :  { %v205_v35 = vmax.f32 %v204_v34, 0.0 }
 0x125   :  { %v206_v36 = vmul.f32 0.032258064, %v205_v35 }
 0x127   :  { %414 = vrsqrt.f32 %v206_v36  ;;  %vm209_vm1 = vcmp.eq.f32.partialorder %v206_v36, inf  ;;  %v212_v39 = vand.u32 2147483648, %v206_v36  ;;  %vm211_vm2 = vcmp.eq.f32.partialorder %v206_v36, 0.0 }
 0x131   :  { %v415_v37 = vpop.eup %414 }
 0x132   :  { %v208_v38 = vmul.f32 %v415_v37, %v206_v36 }
 0x134   :  { %v210_v40 = vsel %vm209_vm1, %v206_v36, %v208_v38 }
 0x135   :  { %v213_v41 = vsel %vm211_vm2, %v212_v39, %v210_v40 }
 0x136   :  { %v214_v42 = vadd.f32 1e-06, %v213_v41 }
 0x138   :  { %416 = vrcp.f32 %v214_v42 }
 0x142   :  { %v417_v44 = vpop.eup %416 }
 0x143   :  { %v220_v46 = vmul.f32 %v417_v44, %v219_v43 }
 0x145   :  { %v227_v48 = vmul.f32 %v252_v45, %v220_v46 }
 0x147   :  { %v234_v49 = vadd.f32 %v253_v47, %v227_v48 }
 0x149   :  { %235 = vst [vmem:[#allocation7] sm:$0xf] %v234_v49 }
 0x14a   :  { %473 = shalt.err (!%p470_p6)
}
 0x14b   :  { %s474_s21 = scalar_lea.hbm %s576_s4, 64 }
 0x14c   :  { %p475_p7 = scmp.ne.s32.totalorder %s576_s4, %s474_s21  ;;  %p478_p8 = scmp.lt.u32.totalorder %s474_s21, %s576_s4 }
 0x14e   :  { %p480_p9 = pnand %p478_p8, %p475_p7 }
 0x150   :  { %483 = shalt.err (!%p480_p9)
}
 0x151   :  { %245 = dma.vmem_to_hbm [thread:$0]  %s243_s18, 64, %s576_s4, [#allocation4]  }
 0x152   :  { %488 = dma.done.wait [#allocation4], 64  }
 0x153   :  { %489 = vsyncadd [#allocation4], 4294967232 }
 0x154   :  { %249 = vsyncpa [#allocation3], 1 }
 0x155   :  { %250 = vsyncpa [#allocation6], 1 }
 0x156   :  { %251 = vsyncpa [#allocation4], 1 }

</bundles_post_ra>
